<compile_context>
chip_gen: v7x
topology: tpu7x:2x2x1
jax: 0.10.0
libtpu: 0.0.40
codegen_flags: <defaults>
</compile_context>

<pallas_src>
import functools

import jax
import jax.numpy as jnp
from jax.experimental import pallas as pl
from jax.experimental.pallas import tpu as pltpu


def _round_up(x, m):
    return (x + m - 1) // m * m


def _glu_kernel(x_ref, wa_ref, wb_ref, ba_ref, bb_ref, o_ref):
    # x_ref: (RT, Kp); wa/wb: (Kp, Np); ba/bb: (1, Np); o_ref: (RT, Np)
    x = x_ref[...]
    ya = jnp.dot(x, wa_ref[...], preferred_element_type=jnp.float32)
    yg = jnp.dot(x, wb_ref[...], preferred_element_type=jnp.float32)
    ya = ya + ba_ref[...].astype(jnp.float32)
    yg = yg + bb_ref[...].astype(jnp.float32)
    sig = 1.0 / (1.0 + jnp.exp(-yg))
    o_ref[...] = (ya * sig).astype(o_ref.dtype)


@functools.partial(jax.jit, static_argnames=("hidden", "row_tile"))
def _glu_2d(x2d, w, b, *, hidden, row_tile):
    rows, k = x2d.shape
    kp = _round_up(k, 128)          # lane-dense contraction dim
    np_ = _round_up(hidden, 128)    # lane-dense output dim

    # dtype-aware sublane packing (f32 -> 8, bf16 -> 16, int8/fp8 -> 32)
    itemsize = jnp.dtype(x2d.dtype).itemsize
    sub = {4: 8, 2: 16, 1: 32}.get(itemsize, 8)

    # Resident weight/bias bytes (double-buffered, conservative).
    w_itemsize = jnp.dtype(w.dtype).itemsize
    w_bytes = (2 * kp * np_ + 2 * np_) * w_itemsize * 2

    # Pick the largest row tile that keeps double-buffered x/out tiles plus the
    # weights inside a ~24 MiB budget (safe on v7x's 64 MiB physical VMEM).
    rt = max(sub, _round_up(min(row_tile, rows), sub))
    budget = 24 * 1024 * 1024
    while rt > sub:
        per_step = 2 * rt * (kp + np_) * itemsize + w_bytes
        if per_step <= budget:
            break
        rt = max(sub, _round_up(rt // 2, sub))
    rows_p = _round_up(rows, rt)

    # Split weight/bias into the GLU halves and zero-pad feature dims. Padded
    # output columns compute 0 * sigmoid(0) = 0 and are sliced off below.
    wa = jnp.pad(w[:, :hidden], ((0, kp - k), (0, np_ - hidden)))
    wb = jnp.pad(w[:, hidden:], ((0, kp - k), (0, np_ - hidden)))
    ba = jnp.pad(b[:hidden].reshape(1, hidden), ((0, 0), (0, np_ - hidden)))
    bb = jnp.pad(b[hidden:].reshape(1, hidden), ((0, 0), (0, np_ - hidden)))
    xp = jnp.pad(x2d, ((0, rows_p - rows), (0, kp - k)))

    grid = (rows_p // rt,)
    row_spec = pl.BlockSpec((rt, kp), lambda i: (i, 0))
    out_spec = pl.BlockSpec((rt, np_), lambda i: (i, 0))
    wmat_spec = pl.BlockSpec((kp, np_), lambda i: (0, 0))
    bias_spec = pl.BlockSpec((1, np_), lambda i: (0, 0))

    vmem_need = 2 * rt * (kp + np_) * itemsize + w_bytes
    vmem_limit = int(min(48 * 1024 * 1024,
                         max(vmem_need + (8 << 20), 24 * 1024 * 1024)))

    out = pl.pallas_call(
        _glu_kernel,
        out_shape=jax.ShapeDtypeStruct((rows_p, np_), x2d.dtype),
        grid_spec=pltpu.PrefetchScalarGridSpec(
            num_scalar_prefetch=0,
            grid=grid,
            in_specs=[row_spec, wmat_spec, wmat_spec, bias_spec, bias_spec],
            out_specs=out_spec,
        ),
        compiler_params=pltpu.CompilerParams(
            dimension_semantics=("parallel",),
            vmem_limit_bytes=vmem_limit,
        ),
    )(xp, wa, wb, ba, bb)

    return out[:rows, :hidden]


def gated_linear_unit(x, params, *, row_tile=256):
    """x: (..., input_size) -> GLU(Linear(x)) with shape (..., hidden)."""
    # TODO(synk): nn.Dropout is identity here (dropout=0.0 / inference); no
    # stochastic dropout mask is applied inside the kernel.
    w = params["fc_weight"]   # (input_size, 2*hidden) == torch fc.weight.T
    b = params["fc_bias"]     # (2*hidden,)
    input_size = x.shape[-1]
    hidden = w.shape[-1] // 2
    x2d = x.reshape(-1, input_size)
    out2d = _glu_2d(x2d, w, b, hidden=hidden, row_tile=row_tile)
    return out2d.reshape(*x.shape[:-1], hidden)


def _reference(x, params):
    w = params["fc_weight"]
    b = params["fc_bias"]
    hidden = w.shape[-1] // 2
    y = x @ w + b
    a, g = y[..., :hidden], y[..., hidden:]
    return a * jax.nn.sigmoid(g)


if __name__ == "__main__":
    batch, seq, input_size = 2, 8, 32
    hidden = input_size  # hidden_size=None -> hidden_size = input_size
    key = jax.random.PRNGKey(0)
    kx, kw = jax.random.split(key, 2)

    x = jax.random.normal(kx, (batch, seq, input_size), dtype=jnp.float32)

    # fc: xavier_uniform weight, zero bias (matches the PyTorch init scheme).
    limit = (6.0 / (input_size + 2 * hidden)) ** 0.5
    params = {
        "fc_weight": jax.random.uniform(
            kw, (input_size, 2 * hidden), jnp.float32, -limit, limit
        ),
        "fc_bias": jnp.zeros((2 * hidden,), jnp.float32),
    }

    out = gated_linear_unit(x, params)
    out = jax.block_until_ready(out)

    ref = _reference(x, params)
    assert out.shape == (batch, seq, hidden)
    if jnp.allclose(out, ref, atol=1e-5, rtol=1e-5):
        print("KERNEL_OK")
</pallas_src>

<mosaic_0001>
module attributes {stable_mosaic.version = 11 : i64} {
  func.func @_glu_kernel(%arg0: i32, %arg1: memref<16x128xf32, #tpu.memory_space<vmem>>, %arg2: memref<128x128xf32, #tpu.memory_space<vmem>>, %arg3: memref<128x128xf32, #tpu.memory_space<vmem>>, %arg4: memref<1x128xf32, #tpu.memory_space<vmem>>, %arg5: memref<1x128xf32, #tpu.memory_space<vmem>>, %arg6: memref<16x128xf32, #tpu.memory_space<vmem>>) attributes {dimension_semantics = [#tpu.dimension_semantics<parallel>], iteration_bounds = array<i64: 1>, scalar_prefetch = 0 : i64, scratch_operands = 0 : i64, tpu.core_type = #tpu.core_type<tc>, window_params = [{transform_indices = @transform_0, window_bounds = array<i64: 16, 128>}, {pipeline_mode = #tpu.pipeline_mode<synchronous>, transform_indices = @transform_1, window_bounds = array<i64: 128, 128>}, {pipeline_mode = #tpu.pipeline_mode<synchronous>, transform_indices = @transform_2, window_bounds = array<i64: 128, 128>}, {pipeline_mode = #tpu.pipeline_mode<synchronous>, transform_indices = @transform_3, window_bounds = array<i64: 1, 128>}, {pipeline_mode = #tpu.pipeline_mode<synchronous>, transform_indices = @transform_4, window_bounds = array<i64: 1, 128>}, {transform_indices = @transform_5, window_bounds = array<i64: 16, 128>}]} {
    %c0 = arith.constant 0 : index
    %c0_0 = arith.constant 0 : index
    %0 = vector.load %arg1[%c0, %c0_0] : memref<16x128xf32, #tpu.memory_space<vmem>>, vector<16x128xf32>
    %c0_1 = arith.constant 0 : index
    %c0_2 = arith.constant 0 : index
    %1 = vector.load %arg2[%c0_1, %c0_2] : memref<128x128xf32, #tpu.memory_space<vmem>>, vector<128x128xf32>
    %cst = arith.constant dense<0.000000e+00> : vector<16x128xf32>
    %2 = tpu.matmul %0, %1, %cst {dimension_numbers = #tpu.dot_dimension_numbers<[1], [0], [0], [1], [0, 0, 1, 1], [], []>} : vector<16x128xf32>, vector<128x128xf32>, vector<16x128xf32> -> vector<16x128xf32>
    %c0_3 = arith.constant 0 : index
    %c0_4 = arith.constant 0 : index
    %3 = vector.load %arg3[%c0_3, %c0_4] : memref<128x128xf32, #tpu.memory_space<vmem>>, vector<128x128xf32>
    %cst_5 = arith.constant dense<0.000000e+00> : vector<16x128xf32>
    %4 = tpu.matmul %0, %3, %cst_5 {dimension_numbers = #tpu.dot_dimension_numbers<[1], [0], [0], [1], [0, 0, 1, 1], [], []>} : vector<16x128xf32>, vector<128x128xf32>, vector<16x128xf32> -> vector<16x128xf32>
    %c0_6 = arith.constant 0 : index
    %c0_7 = arith.constant 0 : index
    %5 = vector.load %arg4[%c0_6, %c0_7] : memref<1x128xf32, #tpu.memory_space<vmem>>, vector<1x128xf32>
    %6 = vector.broadcast %5 : vector<1x128xf32> to vector<16x128xf32>
    %7 = arith.addf %2, %6 : vector<16x128xf32>
    %c0_8 = arith.constant 0 : index
    %c0_9 = arith.constant 0 : index
    %8 = vector.load %arg5[%c0_8, %c0_9] : memref<1x128xf32, #tpu.memory_space<vmem>>, vector<1x128xf32>
    %9 = vector.broadcast %8 : vector<1x128xf32> to vector<16x128xf32>
    %10 = arith.addf %4, %9 : vector<16x128xf32>
    %cst_10 = arith.constant 0.000000e+00 : f32
    %11 = vector.broadcast %cst_10 : f32 to vector<16x128xf32>
    %12 = arith.subf %11, %10 : vector<16x128xf32>
    %13 = math.exp %12 : vector<16x128xf32>
    %cst_11 = arith.constant 1.000000e+00 : f32
    %14 = vector.broadcast %cst_11 : f32 to vector<16x128xf32>
    %15 = arith.addf %14, %13 : vector<16x128xf32>
    %cst_12 = arith.constant 1.000000e+00 : f32
    %16 = vector.broadcast %cst_12 : f32 to vector<16x128xf32>
    %17 = arith.divf %16, %15 : vector<16x128xf32>
    %18 = arith.mulf %7, %17 : vector<16x128xf32>
    %c0_13 = arith.constant 0 : index
    %c0_14 = arith.constant 0 : index
    %19 = vector.load %arg6[%c0_13, %c0_14] : memref<16x128xf32, #tpu.memory_space<vmem>>, vector<16x128xf32>
    tpu.vector_store %arg6[%c0_13, %c0_14], %18 {strides = array<i32>} : memref<16x128xf32, #tpu.memory_space<vmem>>, vector<16x128xf32>,
    return
  }
  func.func @transform_0(%arg0: i32) -> (i32, i32) {
    %c0_i32 = arith.constant 0 : i32
    %c0_i32_0 = arith.constant 0 : i32
    return %arg0, %c0_i32 : i32, i32
  }
  func.func @transform_1(%arg0: i32) -> (i32, i32) {
    %c0_i32 = arith.constant 0 : i32
    %c0_i32_0 = arith.constant 0 : i32
    %c0_i32_1 = arith.constant 0 : i32
    return %c0_i32, %c0_i32_0 : i32, i32
  }
  func.func @transform_2(%arg0: i32) -> (i32, i32) {
    %c0_i32 = arith.constant 0 : i32
    %c0_i32_0 = arith.constant 0 : i32
    %c0_i32_1 = arith.constant 0 : i32
    return %c0_i32, %c0_i32_0 : i32, i32
  }
  func.func @transform_3(%arg0: i32) -> (i32, i32) {
    %c0_i32 = arith.constant 0 : i32
    %c0_i32_0 = arith.constant 0 : i32
    %c0_i32_1 = arith.constant 0 : i32
    return %c0_i32, %c0_i32_0 : i32, i32
  }
  func.func @transform_4(%arg0: i32) -> (i32, i32) {
    %c0_i32 = arith.constant 0 : i32
    %c0_i32_0 = arith.constant 0 : i32
    %c0_i32_1 = arith.constant 0 : i32
    return %c0_i32, %c0_i32_0 : i32, i32
  }
  func.func @transform_5(%arg0: i32) -> (i32, i32) {
    %c0_i32 = arith.constant 0 : i32
    %c0_i32_0 = arith.constant 0 : i32
    return %arg0, %c0_i32 : i32, i32
  }
}

</mosaic_0001>

<bundles_post_ra>
// kernel: _glu_2d.1
= control target key start
LH: loop header
LB: loop body
LE: loop exit
PB: predicated region body
PF: predicated region fallthrough
CT: control target
= control target key end

     0   :  { %s611_s0 = inlined_call_operand.vmem [shape: f32[16,128], index: 0, kind: input, shape index: {}]   ;;  %s612_s1 = inlined_call_operand.vmem [shape: f32[128,128], index: 1, kind: input, shape index: {}]   ;;  %s613_s2 = inlined_call_operand.vmem [shape: f32[128,128], index: 2, kind: input, shape index: {}]   ;;  %s614_s3 = inlined_call_operand.vmem [shape: f32[1,128], index: 3, kind: input, shape index: {}]   ;;  %s615_s4 = inlined_call_operand.vmem [shape: f32[1,128], index: 4, kind: input, shape index: {}]   ;;  %s616_s5 = inlined_call_operand.hbm [shape: f32[16,128], index: 5, kind: output, shape index: {}]  }
   0x1   :  { %v39_v0 = vld [vmem:[%s613_s2] sm:$0xff]  ;;  %v40_v1 = vld [vmem:[%s613_s2 + $0x8] sm:$0xff]  ;;  %v41_v2 = vld [vmem:[%s613_s2 + $0x10] sm:$0xff] }
   0x2   :  { %v391_v3 = vpack.c.bf16 %v40_v1, %v39_v0  ;;  %v42_v4 = vld [vmem:[%s613_s2 + $0x18] sm:$0xff]  ;;  %v43_v6 = vld [vmem:[%s613_s2 + $0x20] sm:$0xff]  ;;  %v44_v7 = vld [vmem:[%s613_s2 + $0x28] sm:$0xff] }
   0x3   :  { %v395_v5 = vpack.c.bf16 %v42_v4, %v41_v2  ;;  %v23_v8 = vld [vmem:[%s612_s1] sm:$0xff]  ;;  %v399_v9 = vpack.c.bf16 %v44_v7, %v43_v6  ;;  %v45_v10 = vld [vmem:[%s613_s2 + $0x30] sm:$0xff]  ;;  %v46_v11 = vld [vmem:[%s613_s2 + $0x38] sm:$0xff] }
   0x4   :  { %392 = vmatprep.subr.bf16.mxu1 %v391_v3  ;;  %v24_v12 = vld [vmem:[%s612_s1 + $0x8] sm:$0xff]  ;;  %v25_v14 = vld [vmem:[%s612_s1 + $0x10] sm:$0xff]  ;;  %v26_v15 = vld [vmem:[%s612_s1 + $0x18] sm:$0xff]  ;;  %v403_v20 = vpack.c.bf16 %v46_v11, %v45_v10 }
   0x5   :  { %394 = vmatpush3.bf16.msra.mxu1 %v391_v3  ;;  %v359_v13 = vpack.c.bf16 %v24_v12, %v23_v8  ;;  %v21_v16 = vld [vmem:[%s611_s0] sm:$0xff]  ;;  %v363_v17 = vpack.c.bf16 %v26_v15, %v25_v14  ;;  %v28_v19 = vld [vmem:[%s612_s1 + $0x28] sm:$0xff]  ;;  %v29_v24 = vld [vmem:[%s612_s1 + $0x30] sm:$0xff] }
   0x6   :  { %396 = vmatprep.subr.bf16.mxu1 %v395_v5  ;;  %356 = vmatprep.mubr.f32.mxu1 %v21_v16  ;;  %v27_v18 = vld [vmem:[%s612_s1 + $0x20] sm:$0xff]  ;;  %v48_v22 = vld [vmem:[%s613_s2 + $0x48] sm:$0xff]  ;;  %v30_v25 = vld [vmem:[%s612_s1 + $0x38] sm:$0xff] }
   0x7   :  { %321 = vmatprep.mubr.f32.mxu0 %v21_v16  ;;  %360 = vmatprep.subr.bf16.mxu0 %v359_v13  ;;  %v47_v21 = vld [vmem:[%s613_s2 + $0x40] sm:$0xff]  ;;  %v367_v23 = vpack.c.bf16 %v28_v19, %v27_v18 }
   0x8   :  { %362 = vmatpush3.bf16.msra.mxu0 %v359_v13 }
   0x9   :  { %398 = vmatpush3.bf16.msra.mxu1 %v395_v5  ;;  %364 = vmatprep.subr.bf16.mxu0 %v363_v17 }
   0xa   :  { %400 = vmatprep.subr.bf16.mxu1 %v399_v9 }
   0xb   :  { %10 = vsyncpa [#allocation3], 0  ;;  %v407_v26 = vpack.c.bf16 %v48_v22, %v47_v21  ;;  %v49_v27 = vld [vmem:[%s613_s2 + $0x50] sm:$0xff]  ;;  %v50_v28 = vld [vmem:[%s613_s2 + $0x58] sm:$0xff]  ;;  %v371_v29 = vpack.c.bf16 %v30_v25, %v29_v24 }
   0xc   :  { %366 = vmatpush3.bf16.msra.mxu0 %v363_v17  ;;  %v31_v30 = vld [vmem:[%s612_s1 + $0x40] sm:$0xff]  ;;  %v32_v31 = vld [vmem:[%s612_s1 + $0x48] sm:$0xff]  ;;  %v411_v32 = vpack.c.bf16 %v50_v28, %v49_v27  ;;  %v33_v36 = vld [vmem:[%s612_s1 + $0x50] sm:$0xff] }
   0xd   :  { %402 = vmatpush3.bf16.msra.mxu1 %v399_v9  ;;  %368 = vmatprep.subr.bf16.mxu0 %v367_v23  ;;  %v51_v33 = vld [vmem:[%s613_s2 + $0x60] sm:$0xff]  ;;  %v52_v34 = vld [vmem:[%s613_s2 + $0x68] sm:$0xff]  ;;  %v375_v35 = vpack.c.bf16 %v32_v31, %v31_v30  ;;  %v34_v37 = vld [vmem:[%s612_s1 + $0x58] sm:$0xff] }
   0xe   :  { %404 = vmatprep.subr.bf16.mxu1 %v403_v20  ;;  %v415_v38 = vpack.c.bf16 %v52_v34, %v51_v33  ;;  %v53_v39 = vld [vmem:[%s613_s2 + $0x70] sm:$0xff]  ;;  %v54_v40 = vld [vmem:[%s613_s2 + $0x78] sm:$0xff]  ;;  %v379_v41 = vpack.c.bf16 %v34_v37, %v33_v36  ;;  %v35_v42 = vld [vmem:[%s612_s1 + $0x60] sm:$0xff] }
   0xf   :  { %v36_v43 = vld [vmem:[%s612_s1 + $0x68] sm:$0xff]  ;;  %v419_v44 = vpack.c.bf16 %v54_v40, %v53_v39  ;;  %v37_v46 = vld [vmem:[%s612_s1 + $0x70] sm:$0xff]  ;;  %v38_v47 = vld [vmem:[%s612_s1 + $0x78] sm:$0xff] }
  0x10   :  { %370 = vmatpush3.bf16.msra.mxu0 %v367_v23  ;;  %v383_v45 = vpack.c.bf16 %v36_v43, %v35_v42  ;;  %v387_v48 = vpack.c.bf16 %v38_v47, %v37_v46  ;;  %v22_v49 = vld [vmem:[%s611_s0 + $0x8] sm:$0xff]  ;;  %v252_v50 = vld [vmem:[%s615_s4] ss:$0 sm:$0xff]  ;;  %s458_s4 = smov [#allocation2]  }
  0x11   :  { %406 = vmatpush3.bf16.msra.mxu1 %v403_v20  ;;  %372 = vmatprep.subr.bf16.mxu0 %v371_v29  ;;  %v251_v1 = vld [vmem:[%s614_s3] ss:$0 sm:$0xff]  ;;  %s240_s12 = sshll.u32 %s458_s4, 4  ;;  %s241_s12 = int_to_ptr.vmem [resolvable:$true] %s240_s12 }
  0x12   :  { %408 = vmatprep.subr.bf16.mxu1 %v407_v26  ;;  %s434_s13 = scalar_lea.vmem %s241_s12, 256  ;;  %p439_p1 = scmp.lt.s32.totalorder %s241_s12, %s241_s12 }
  0x13   :  { %p435_p0 = scmp.ne.s32.totalorder %s241_s12, %s434_s13  ;;  %p440_p2 = scmp.lt.s32.totalorder %s434_s13, %s434_s13 }
  0x14   :  { %374 = vmatpush3.bf16.msra.mxu0 %v371_v29 }
  0x15   :  { %410 = vmatpush3.bf16.msra.mxu1 %v407_v26  ;;  %376 = vmatprep.subr.bf16.mxu0 %v375_v35  ;;  %p441_p3 = por %p440_p2, %p439_p1 }
  0x16   :  { %412 = vmatprep.subr.bf16.mxu1 %v411_v32 }
  0x17   :  { %p442_p4 = pnand %p441_p3, %p435_p0 }
  0x18   :  { %378 = vmatpush3.bf16.msra.mxu0 %v375_v35 }
  0x19   :  { %414 = vmatpush3.bf16.msra.mxu1 %v411_v32  ;;  %380 = vmatprep.subr.bf16.mxu0 %v379_v41 }
  0x1a   :  { %416 = vmatprep.subr.bf16.mxu1 %v415_v38 }
  0x1c   :  { %382 = vmatpush3.bf16.msra.mxu0 %v379_v41 }
  0x1d   :  { %418 = vmatpush3.bf16.msra.mxu1 %v415_v38  ;;  %384 = vmatprep.subr.bf16.mxu0 %v383_v45 }
  0x1e   :  { %420 = vmatprep.subr.bf16.mxu1 %v419_v44 }
  0x20   :  { %386 = vmatpush3.bf16.msra.mxu0 %v383_v45 }
  0x21   :  { %422 = vmatpush3.bf16.msra.mxu1 %v419_v44  ;;  %388 = vmatprep.subr.bf16.mxu0 %v387_v48 }
  0x24   :  { %357 = vmatmul.mubr.f32.vlgmr.msra.gmra.mrb[0].mxu1 %v22_v49  ;;  %390 = vmatpush3.bf16.msra.mxu0 %v387_v48 }
  0x27   :  { %322 = vmatmul.mubr.f32.vlgmr.msra.gmra.mrb[0].mxu0 %v22_v49 }
  0xf7   :  { %v358_v51 = vpop.f32.mrb[0].mxu1 }
  0xf8   :  { %v216_v52 = vadd.f32 %v358_v51, %v252_v50  ;;  %v210_v53 = vpop.f32.mrb[1].mxu1 }
  0xf9   :  { %v211_v54 = vadd.f32 %v252_v50, %v210_v53 }
  0xfa   :  { %v220_v55 = vsub.f32 0.0, %v216_v52  ;;  %v323_v58 = vpop.f32.mrb[0].mxu0 }
  0xfb   :  { %v219_v56 = vsub.f32 0.0, %v211_v54  ;;  %v128_v60 = vpop.f32.mrb[1].mxu0  ;;  %v134_v2 = vadd.f32 %v323_v58, %v251_v1 }
  0xfc   :  { %v223_v57 = vmul.f32 1.442695, %v220_v55  ;;  %v129_v3 = vadd.f32 %v251_v1, %v128_v60 }
  0xfd   :  { %v221_v59 = vmul.f32 1.442695, %v219_v56 }
  0xfe   :  { %426 = vpow2.f32 %v223_v57 }
  0xff   :  { %428 = vpow2.f32 %v221_v59 }
 0x108   :  { %v427_v61 = vpop.eup %426 }
 0x109   :  { %v429_v62 = vpop.eup %428  ;;  %v226_v63 = vadd.f32 1.0, %v427_v61 }
 0x10a   :  { %v225_v0 = vadd.f32 1.0, %v429_v62 }
 0x10b   :  { %430 = vrcp.f32 %v226_v63 }
 0x10c   :  { %432 = vrcp.f32 %v225_v0 }
 0x115   :  { %v431_v4 = vpop.eup %430 }
 0x116   :  { %v433_v5 = vpop.eup %432  ;;  %v232_v6 = vmul.f32 %v431_v4, %v134_v2 }
 0x117   :  { %v231_v7 = vmul.f32 %v433_v5, %v129_v3 }
 0x118   :  { %234 = vst [vmem:[#allocation2 + $0x8] sm:$0xff] %v232_v6 }
 0x119   :  { %233 = vst [vmem:[#allocation2] sm:$0xff] %v231_v7 }
 0x11a   :  { %445 = shalt.err (!%p442_p4)
}
 0x11b   :  { %s446_s15 = scalar_lea.hbm %s616_s5, 256 }
 0x11c   :  { %p447_p5 = scmp.ne.s32.totalorder %s616_s5, %s446_s15  ;;  %p450_p6 = scmp.lt.u32.totalorder %s446_s15, %s616_s5 }
 0x11e   :  { %p452_p7 = pnand %p450_p6, %p447_p5 }
 0x120   :  { %455 = shalt.err (!%p452_p7)
}
 0x121   :  { %s459_s20 = smov 128   ;;  %s460_s21 = smov 8  }
 0x122   :  { %246 = dma.vmem_to_hbm [thread:$0]  %s241_s12, 256, %s616_s5, [#allocation3], %s459_s20, %s459_s20, %s460_s21  }
 0x123   :  { %456 = dma.done.wait [#allocation3], 256  }
 0x124   :  { %457 = vsyncadd [#allocation3], 4294967040 }
 0x125   :  { %250 = vsyncpa [#allocation3], 1 }

</bundles_post_ra>
